<compile_context>
chip_gen: v5e
topology: v5e:2x2
jax: 0.10.0
libtpu: 0.0.40
codegen_flags: <defaults>
</compile_context>

<pallas_src>
import functools

import jax
import jax.numpy as jnp
from jax.experimental import pallas as pl
from jax.experimental.pallas import tpu as pltpu

IN_FEATS = 64
NUM_TARGETS = 4
MAX_TILE_N = 1024   # large row tile: amortizes per-step overhead, tiny vs VMEM


def _round_up(x, m):
    return ((x + m - 1) // m) * m


def _linear_readout_kernel(x_ref, wslab_ref, out_ref, *, in_feats, bias_row):
    """One row tile of the linear readout: out = x @ W + b."""
    # x_ref:     (tile_n, in_feats)       node-feature row tile
    # wslab_ref: (slab_rows, num_targets) rows [0, in_feats) = W, row bias_row = bias
    # out_ref:   (tile_n, num_targets)    narrow output tile (masked stores OK)
    x = x_ref[...]
    w = wslab_ref[:in_feats, :]                    # sublane-aligned static slice
    b = wslab_ref[bias_row:bias_row + 1, :]        # (1, num_targets) bias row
    out_ref[...] = jnp.dot(x, w, preferred_element_type=jnp.float32) + b


def pack_params(w, b):
    """Pack (in_feats, T) weight and (T,) bias into one parameter slab.

    The bias sits at row `bias_row = round_up(in_feats, 8)` so both in-kernel
    slices stay sublane-aligned for any in_feats (not just multiples of 8).
    """
    in_feats, t = w.shape
    bias_row = _round_up(in_feats, 8)
    slab = jnp.zeros((bias_row + 8, t), jnp.float32)
    slab = slab.at[:in_feats, :].set(w.astype(jnp.float32))
    slab = slab.at[bias_row, :].set(b.astype(jnp.float32))
    return slab, bias_row


def linear_readout(node_feat, w_slab, bias_row, num_targets):
    """Pallas-backed LinearReadOut forward: node_feat (N, F) -> (N, num_targets)."""
    n, in_feats = node_feat.shape
    slab_rows = w_slab.shape[0]

    # Small graphs: one block covering the whole problem (no grid/pipeline
    # overhead, no padding).  Large graphs: 1024-row tiles; Pallas masks the
    # ragged last tile (no wrapper-side pad or slice HBM passes).
    tile_n = n if n <= MAX_TILE_N else MAX_TILE_N
    grid = (pl.cdiv(n, tile_n),)

    cost = pl.CostEstimate(
        flops=2 * n * in_feats * num_targets,
        transcendentals=0,
        bytes_accessed=4 * (n * in_feats
                            + slab_rows * num_targets
                            + n * num_targets),
    )

    return pl.pallas_call(
        functools.partial(_linear_readout_kernel,
                          in_feats=in_feats, bias_row=bias_row),
        out_shape=jax.ShapeDtypeStruct((n, num_targets), jnp.float32),
        grid=grid,
        in_specs=[
            # node-feature row tiles, streamed along the (parallel) grid axis
            pl.BlockSpec((tile_n, in_feats), lambda i: (i, 0)),
            # packed weight+bias slab: constant block index -> one DMA, VMEM-resident
            pl.BlockSpec((slab_rows, num_targets), lambda i: (0, 0)),
        ],
        # Narrow (num_targets-wide) output tile: last dim equals full array dim,
        # so this is legal; 32x less HBM write traffic than a lane-padded slab.
        out_specs=pl.BlockSpec((tile_n, num_targets), lambda i: (i, 0)),
        compiler_params=pltpu.CompilerParams(
            dimension_semantics=("parallel",)),
        cost_estimate=cost,
    )(node_feat, w_slab)


def make_params(key):
    """Deterministic synthetic nn.Linear parameters (PyTorch-style uniform init)."""
    kw, kb = jax.random.split(key)
    scale = 1.0 / jnp.sqrt(jnp.float32(IN_FEATS))
    w = jax.random.uniform(kw, (IN_FEATS, NUM_TARGETS), jnp.float32, -scale, scale)
    b = jax.random.uniform(kb, (NUM_TARGETS,), jnp.float32, -scale, scale)
    return w, b


if __name__ == "__main__":
    key = jax.random.PRNGKey(0)
    k_small, k_params, k_big = jax.random.split(key, 3)

    w, b = make_params(k_params)
    w_slab, bias_row = pack_params(w, b)

    # Small graph (200 nodes) -> single-block path.
    n_small = 200
    x_small = jax.random.normal(k_small, (n_small, IN_FEATS), jnp.float32)
    out_small = jax.block_until_ready(
        linear_readout(x_small, w_slab, bias_row, NUM_TARGETS))
    ref_small = x_small @ w + b
    assert out_small.shape == (n_small, NUM_TARGETS)
    assert out_small.dtype == jnp.float32
    assert jnp.allclose(out_small, ref_small, rtol=1e-5, atol=1e-5)

    # Larger graph (2500 nodes) -> tiled path with a ragged (Pallas-masked) last tile.
    n_big = 2500
    x_big = jax.random.normal(k_big, (n_big, IN_FEATS), jnp.float32)
    out_big = jax.block_until_ready(
        linear_readout(x_big, w_slab, bias_row, NUM_TARGETS))
    ref_big = x_big @ w + b
    assert out_big.shape == (n_big, NUM_TARGETS)
    assert jnp.allclose(out_big, ref_big, rtol=1e-5, atol=1e-5)

    print("KERNEL_OK")
</pallas_src>

<mosaic_0001>
module attributes {stable_mosaic.version = 11 : i64} {
  func.func @_linear_readout_kernel(%arg0: i32, %arg1: memref<200x64xf32, #tpu.memory_space<vmem>>, %arg2: memref<72x4xf32, #tpu.memory_space<vmem>>, %arg3: memref<200x4xf32, #tpu.memory_space<vmem>>) attributes {dimension_semantics = [#tpu.dimension_semantics<parallel>], iteration_bounds = array<i64: 1>, scalar_prefetch = 0 : i64, scratch_operands = 0 : i64, tpu.core_type = #tpu.core_type<tc>, window_params = [{transform_indices = @transform_0, window_bounds = array<i64: 200, 64>}, {pipeline_mode = #tpu.pipeline_mode<synchronous>, transform_indices = @transform_1, window_bounds = array<i64: 72, 4>}, {transform_indices = @transform_2, window_bounds = array<i64: 200, 4>}]} {
    %c0 = arith.constant 0 : index
    %c0_0 = arith.constant 0 : index
    %0 = vector.load %arg1[%c0, %c0_0] : memref<200x64xf32, #tpu.memory_space<vmem>>, vector<200x64xf32>
    %c0_1 = arith.constant 0 : index
    %c0_2 = arith.constant 0 : index
    %1 = vector.load %arg2[%c0_1, %c0_2] : memref<72x4xf32, #tpu.memory_space<vmem>>, vector<64x4xf32>
    %c64 = arith.constant 64 : index
    %c0_3 = arith.constant 0 : index
    %2 = vector.load %arg2[%c64, %c0_3] : memref<72x4xf32, #tpu.memory_space<vmem>>, vector<1x4xf32>
    %cst = arith.constant dense<0.000000e+00> : vector<200x4xf32>
    %3 = tpu.matmul %0, %1, %cst {dimension_numbers = #tpu.dot_dimension_numbers<[1], [0], [0], [1], [0, 0, 1, 1], [], []>} : vector<200x64xf32>, vector<64x4xf32>, vector<200x4xf32> -> vector<200x4xf32>
    %4 = vector.broadcast %2 : vector<1x4xf32> to vector<200x4xf32>
    %5 = arith.addf %3, %4 : vector<200x4xf32>
    %c0_4 = arith.constant 0 : index
    %c0_5 = arith.constant 0 : index
    %6 = vector.load %arg3[%c0_4, %c0_5] : memref<200x4xf32, #tpu.memory_space<vmem>>, vector<200x4xf32>
    tpu.vector_store %arg3[%c0_4, %c0_5], %5 {strides = array<i32>} : memref<200x4xf32, #tpu.memory_space<vmem>>, vector<200x4xf32>,
    return
  }
  func.func @transform_0(%arg0: i32) -> (i32, i32) {
    %c0_i32 = arith.constant 0 : i32
    %c0_i32_0 = arith.constant 0 : i32
    return %arg0, %c0_i32 : i32, i32
  }
  func.func @transform_1(%arg0: i32) -> (i32, i32) {
    %c0_i32 = arith.constant 0 : i32
    %c0_i32_0 = arith.constant 0 : i32
    %c0_i32_1 = arith.constant 0 : i32
    return %c0_i32, %c0_i32_0 : i32, i32
  }
  func.func @transform_2(%arg0: i32) -> (i32, i32) {
    %c0_i32 = arith.constant 0 : i32
    %c0_i32_0 = arith.constant 0 : i32
    return %arg0, %c0_i32 : i32, i32
  }
}

</mosaic_0001>

<bundles_post_ra>
// kernel: tpu_custom_call.1
= control target key start
LH: loop header
LB: loop body
LE: loop exit
PB: predicated region body
PF: predicated region fallthrough
CT: control target
= control target key end

     0   :  { %vm46_vm0 = vcmask 523264   ;;  %vm214_vm1 = vcmask 31744   ;;  %s563_s1 = inlined_call_operand.vmem [shape: f32[72,4], index: 1, kind: input, shape index: {}]   ;;  %s564_s0 = inlined_call_operand.vmem [shape: f32[200,64], index: 0, kind: input, shape index: {}]   ;;  %s565_s2 = inlined_call_operand.vmem [shape: f32[200,4], index: 2, kind: output, shape index: {}]  }
   0x1   :  { %v43_v0 = vld [vmem:[%s563_s1 + $0x38] sm:$0xff]  ;;  %v42_v1 = vld [vmem:[%s563_s1 + $0x30] sm:$0xff]  ;;  %v41_v2 = vld [vmem:[%s563_s1 + $0x28] sm:$0xff] }
   0x2   :  { %270 = vmatpush.msra.mxu2 %v43_v0  ;;  %271 = vmatpush.msra.mxu3 %v43_v0  ;;  %v40_v3 = vld [vmem:[%s563_s1 + $0x20] sm:$0xff]  ;;  %v39_v4 = vld [vmem:[%s563_s1 + $0x18] sm:$0xff]  ;;  %v38_v5 = vld [vmem:[%s563_s1 + $0x10] sm:$0xff] }
   0x3   :  { %130 = vmatpush.msra.mxu0 %v43_v0  ;;  %269 = vmatpush.msra.mxu1 %v43_v0  ;;  %v37_v6 = vld [vmem:[%s563_s1 + $0x8] sm:$0xff]  ;;  %v36_v7 = vld [vmem:[%s563_s1] sm:$0xff]  ;;  %v30_v9 = vld [vmem:[%s564_s0 + $0x98] sm:$0xff] }
   0x4   :  { %273 = vmatpush.msra.mxu2 %v42_v1  ;;  %274 = vmatpush.msra.mxu3 %v42_v1  ;;  %v23_v8 = vld [vmem:[%s564_s0 + $0x60] sm:$0xff]  ;;  %v17_v11 = vld [vmem:[%s564_s0 + $0x30] sm:$0xff]  ;;  %v24_v12 = vld [vmem:[%s564_s0 + $0x68] sm:$0xff] }
   0x5   :  { %131 = vmatpush.msra.mxu0 %v42_v1  ;;  %272 = vmatpush.msra.mxu1 %v42_v1  ;;  %v11_v10 = vld [vmem:[%s564_s0] sm:$0xff]  ;;  %v12_v14 = vld [vmem:[%s564_s0 + $0x8] sm:$0xff]  ;;  %v18_v15 = vld [vmem:[%s564_s0 + $0x38] sm:$0xff] }
   0x6   :  { %276 = vmatpush.msra.mxu2 %v41_v2  ;;  %277 = vmatpush.msra.mxu3 %v41_v2  ;;  %v31_v13 = vld [vmem:[%s564_s0 + $0xa0] sm:$0xff]  ;;  %v25_v16 = vld [vmem:[%s564_s0 + $0x70] sm:$0xff]  ;;  %v32_v17 = vld [vmem:[%s564_s0 + $0xa8] sm:$0xff] }
   0x7   :  { %132 = vmatpush.msra.mxu0 %v41_v2  ;;  %275 = vmatpush.msra.mxu1 %v41_v2  ;;  %v13_v18 = vld [vmem:[%s564_s0 + $0x10] sm:$0xff]  ;;  %v19_v19 = vld [vmem:[%s564_s0 + $0x40] sm:$0xff]  ;;  %v26_v20 = vld [vmem:[%s564_s0 + $0x78] sm:$0xff] }
   0x8   :  { %279 = vmatpush.msra.mxu2 %v40_v3  ;;  %280 = vmatpush.msra.mxu3 %v40_v3  ;;  %v33_v21 = vld [vmem:[%s564_s0 + $0xb0] sm:$0xff]  ;;  %v14_v22 = vld [vmem:[%s564_s0 + $0x18] sm:$0xff]  ;;  %v20_v23 = vld [vmem:[%s564_s0 + $0x48] sm:$0xff] }
   0x9   :  { %133 = vmatpush.msra.mxu0 %v40_v3  ;;  %278 = vmatpush.msra.mxu1 %v40_v3  ;;  %v27_v24 = vld [vmem:[%s564_s0 + $0x80] sm:$0xff]  ;;  %v34_v25 = vld [vmem:[%s564_s0 + $0xb8] sm:$0xff]  ;;  %v21_v27 = vld [vmem:[%s564_s0 + $0x50] sm:$0xff] }
   0xa   :  { %282 = vmatpush.msra.mxu2 %v39_v4  ;;  %283 = vmatpush.msra.mxu3 %v39_v4  ;;  %v15_v26 = vld [vmem:[%s564_s0 + $0x20] sm:$0xff]  ;;  %v28_v28 = vld [vmem:[%s564_s0 + $0x88] sm:$0xff]  ;;  %v22_v31 = vld [vmem:[%s564_s0 + $0x58] sm:$0xff] }
   0xb   :  { %134 = vmatpush.msra.mxu0 %v39_v4  ;;  %281 = vmatpush.msra.mxu1 %v39_v4  ;;  %v35_v29 = vld [vmem:[%s564_s0 + $0xc0] sm:$0xff]  ;;  %v16_v30 = vld [vmem:[%s564_s0 + $0x28] sm:$0xff]  ;;  %v29_v32 = vld [vmem:[%s564_s0 + $0x90] sm:$0xff] }
   0xc   :  { %285 = vmatpush.msra.mxu2 %v38_v5  ;;  %286 = vmatpush.msra.mxu3 %v38_v5  ;;  %v436_v33 = vld [vmem:[%s563_s1 + $0x40] ss:$0 sm:$0xff] }
   0xd   :  { %135 = vmatpush.msra.mxu0 %v38_v5  ;;  %284 = vmatpush.msra.mxu1 %v38_v5 }
   0xe   :  { %288 = vmatpush.msra.mxu2 %v37_v6  ;;  %289 = vmatpush.msra.mxu3 %v37_v6 }
   0xf   :  { %136 = vmatpush.msra.mxu0 %v37_v6  ;;  %287 = vmatpush.msra.mxu1 %v37_v6 }
  0x10   :  { %291 = vmatpush.msra.mxu2 %v36_v7  ;;  %292 = vmatpush.msra.mxu3 %v36_v7 }
  0x11   :  { %256 = vmatmul.msk.f32.vlgmr.msra.gmra.mxu2 %vm46_vm0, %v23_v8  ;;  %263 = vmatmul.msk.f32.vlgmr.msra.gmra.mxu3 %vm46_vm0, %v30_v9 }
  0x12   :  { %137 = vmatpush.msra.mxu0 %v36_v7  ;;  %290 = vmatpush.msra.mxu1 %v36_v7 }
  0x13   :  { %244 = vmatmul.msk.f32.vlgmr.msra.gmra.mxu0 %vm46_vm0, %v11_v10  ;;  %250 = vmatmul.msk.f32.vlgmr.msra.gmra.mxu1 %vm46_vm0, %v17_v11 }
  0x19   :  { %257 = vmatmul.msk.f32.gmra.mxu2 %vm46_vm0, %v24_v12  ;;  %264 = vmatmul.msk.f32.gmra.mxu3 %vm46_vm0, %v31_v13 }
  0x1b   :  { %245 = vmatmul.msk.f32.gmra.mxu0 %vm46_vm0, %v12_v14  ;;  %251 = vmatmul.msk.f32.gmra.mxu1 %vm46_vm0, %v18_v15 }
  0x21   :  { %258 = vmatmul.msk.f32.gmra.mxu2 %vm46_vm0, %v25_v16  ;;  %265 = vmatmul.msk.f32.gmra.mxu3 %vm46_vm0, %v32_v17 }
  0x23   :  { %246 = vmatmul.msk.f32.gmra.mxu0 %vm46_vm0, %v13_v18  ;;  %252 = vmatmul.msk.f32.gmra.mxu1 %vm46_vm0, %v19_v19 }
  0x29   :  { %259 = vmatmul.msk.f32.gmra.mxu2 %vm46_vm0, %v26_v20  ;;  %266 = vmatmul.msk.f32.gmra.mxu3 %vm46_vm0, %v33_v21 }
  0x2b   :  { %247 = vmatmul.msk.f32.gmra.mxu0 %vm46_vm0, %v14_v22  ;;  %253 = vmatmul.msk.f32.gmra.mxu1 %vm46_vm0, %v20_v23 }
  0x31   :  { %260 = vmatmul.msk.f32.gmra.mxu2 %vm46_vm0, %v27_v24  ;;  %267 = vmatmul.msk.f32.gmra.mxu3 %vm46_vm0, %v34_v25 }
  0x33   :  { %248 = vmatmul.msk.f32.gmra.mxu0 %vm46_vm0, %v15_v26  ;;  %254 = vmatmul.msk.f32.gmra.mxu1 %vm46_vm0, %v21_v27 }
  0x39   :  { %261 = vmatmul.msk.f32.gmra.mxu2 %vm46_vm0, %v28_v28  ;;  %268 = vmatmul.msk.f32.gmra.mxu3 %vm46_vm0, %v35_v29 }
  0x3b   :  { %249 = vmatmul.msk.f32.gmra.mxu0 %vm46_vm0, %v16_v30  ;;  %255 = vmatmul.msk.f32.gmra.mxu1 %vm46_vm0, %v22_v31 }
  0x41   :  { %262 = vmatmul.msk.f32.gmra.mxu2 %vm46_vm0, %v29_v32 }
  0x90   :  { %v139_v34 = vpop.f32.mrf.mxu0  ;;  %v157_v35 = vpop.f32.mrf.mxu1 }
  0x91   :  { %v140_v36 = vadd.f32 %v436_v33, %v139_v34  ;;  %v158_v37 = vadd.f32 %v436_v33, %v157_v35 }
  0x93   :  { %215 = vst.msk [vmem:[%s565_s2] sm:$0xff] %vm214_vm1, %v140_v36 }
  0x94   :  { %v175_v38 = vpop.f32.mrf.mxu2  ;;  %221 = vst.msk [vmem:[%s565_s2 + $0x30] sm:$0xff] %vm214_vm1, %v158_v37  ;;  %v196_v39 = vpop.f32.mrf.mxu3 }
  0x95   :  { %v176_v40 = vadd.f32 %v436_v33, %v175_v38  ;;  %v197_v41 = vadd.f32 %v436_v33, %v196_v39 }
  0x97   :  { %227 = vst.msk [vmem:[%s565_s2 + $0x60] sm:$0xff] %vm214_vm1, %v176_v40 }
  0x98   :  { %234 = vst.msk [vmem:[%s565_s2 + $0x98] sm:$0xff] %vm214_vm1, %v197_v41  ;;  %v142_v42 = vpop.f32.mrf.mxu0  ;;  %v160_v43 = vpop.f32.mrf.mxu1 }
  0x99   :  { %v143_v44 = vadd.f32 %v436_v33, %v142_v42  ;;  %v161_v45 = vadd.f32 %v436_v33, %v160_v43 }
  0x9b   :  { %216 = vst.msk [vmem:[%s565_s2 + $0x8] sm:$0xff] %vm214_vm1, %v143_v44 }
  0x9c   :  { %v178_v46 = vpop.f32.mrf.mxu2  ;;  %222 = vst.msk [vmem:[%s565_s2 + $0x38] sm:$0xff] %vm214_vm1, %v161_v45  ;;  %v199_v47 = vpop.f32.mrf.mxu3 }
  0x9d   :  { %v179_v48 = vadd.f32 %v436_v33, %v178_v46  ;;  %v200_v49 = vadd.f32 %v436_v33, %v199_v47 }
  0x9f   :  { %228 = vst.msk [vmem:[%s565_s2 + $0x68] sm:$0xff] %vm214_vm1, %v179_v48 }
  0xa0   :  { %235 = vst.msk [vmem:[%s565_s2 + $0xa0] sm:$0xff] %vm214_vm1, %v200_v49  ;;  %v145_v50 = vpop.f32.mrf.mxu0  ;;  %v163_v51 = vpop.f32.mrf.mxu1 }
  0xa1   :  { %v146_v52 = vadd.f32 %v436_v33, %v145_v50  ;;  %v164_v53 = vadd.f32 %v436_v33, %v163_v51 }
  0xa3   :  { %217 = vst.msk [vmem:[%s565_s2 + $0x10] sm:$0xff] %vm214_vm1, %v146_v52 }
  0xa4   :  { %v181_v54 = vpop.f32.mrf.mxu2  ;;  %223 = vst.msk [vmem:[%s565_s2 + $0x40] sm:$0xff] %vm214_vm1, %v164_v53  ;;  %v202_v55 = vpop.f32.mrf.mxu3 }
  0xa5   :  { %v182_v56 = vadd.f32 %v436_v33, %v181_v54  ;;  %v203_v57 = vadd.f32 %v436_v33, %v202_v55 }
  0xa7   :  { %229 = vst.msk [vmem:[%s565_s2 + $0x70] sm:$0xff] %vm214_vm1, %v182_v56 }
  0xa8   :  { %236 = vst.msk [vmem:[%s565_s2 + $0xa8] sm:$0xff] %vm214_vm1, %v203_v57  ;;  %v148_v58 = vpop.f32.mrf.mxu0  ;;  %v166_v59 = vpop.f32.mrf.mxu1 }
  0xa9   :  { %v149_v60 = vadd.f32 %v436_v33, %v148_v58  ;;  %v167_v61 = vadd.f32 %v436_v33, %v166_v59 }
  0xab   :  { %218 = vst.msk [vmem:[%s565_s2 + $0x18] sm:$0xff] %vm214_vm1, %v149_v60 }
  0xac   :  { %v184_v62 = vpop.f32.mrf.mxu2  ;;  %224 = vst.msk [vmem:[%s565_s2 + $0x48] sm:$0xff] %vm214_vm1, %v167_v61  ;;  %v205_v63 = vpop.f32.mrf.mxu3 }
  0xad   :  { %v185_v0 = vadd.f32 %v436_v33, %v184_v62  ;;  %v206_v1 = vadd.f32 %v436_v33, %v205_v63 }
  0xaf   :  { %230 = vst.msk [vmem:[%s565_s2 + $0x78] sm:$0xff] %vm214_vm1, %v185_v0 }
  0xb0   :  { %237 = vst.msk [vmem:[%s565_s2 + $0xb0] sm:$0xff] %vm214_vm1, %v206_v1  ;;  %v151_v2 = vpop.f32.mrf.mxu0  ;;  %v169_v3 = vpop.f32.mrf.mxu1 }
  0xb1   :  { %v152_v4 = vadd.f32 %v436_v33, %v151_v2  ;;  %v170_v5 = vadd.f32 %v436_v33, %v169_v3 }
  0xb3   :  { %219 = vst.msk [vmem:[%s565_s2 + $0x20] sm:$0xff] %vm214_vm1, %v152_v4 }
  0xb4   :  { %v187_v6 = vpop.f32.mrf.mxu2  ;;  %225 = vst.msk [vmem:[%s565_s2 + $0x50] sm:$0xff] %vm214_vm1, %v170_v5  ;;  %v208_v7 = vpop.f32.mrf.mxu3 }
  0xb5   :  { %v188_v8 = vadd.f32 %v436_v33, %v187_v6  ;;  %v209_v9 = vadd.f32 %v436_v33, %v208_v7 }
  0xb7   :  { %231 = vst.msk [vmem:[%s565_s2 + $0x80] sm:$0xff] %vm214_vm1, %v188_v8 }
  0xb8   :  { %238 = vst.msk [vmem:[%s565_s2 + $0xb8] sm:$0xff] %vm214_vm1, %v209_v9  ;;  %v154_v10 = vpop.f32.mrf.mxu0  ;;  %v172_v11 = vpop.f32.mrf.mxu1 }
  0xb9   :  { %v155_v12 = vadd.f32 %v436_v33, %v154_v10  ;;  %v173_v13 = vadd.f32 %v436_v33, %v172_v11 }
  0xbb   :  { %220 = vst.msk [vmem:[%s565_s2 + $0x28] sm:$0xff] %vm214_vm1, %v155_v12 }
  0xbc   :  { %v190_v14 = vpop.f32.mrf.mxu2  ;;  %226 = vst.msk [vmem:[%s565_s2 + $0x58] sm:$0xff] %vm214_vm1, %v173_v13  ;;  %v211_v15 = vpop.f32.mrf.mxu3 }
  0xbd   :  { %v191_v16 = vadd.f32 %v436_v33, %v190_v14  ;;  %v212_v17 = vadd.f32 %v436_v33, %v211_v15 }
  0xbf   :  { %232 = vst.msk [vmem:[%s565_s2 + $0x88] sm:$0xff] %vm214_vm1, %v191_v16 }
  0xc0   :  { %239 = vst.msk [vmem:[%s565_s2 + $0xc0] sm:$0xff] %vm214_vm1, %v212_v17 }
  0xc4   :  { %v193_v18 = vpop.f32.mrf.mxu2 }
  0xc5   :  { %v194_v19 = vadd.f32 %v436_v33, %v193_v18 }
  0xc7   :  { %233 = vst.msk [vmem:[%s565_s2 + $0x90] sm:$0xff] %vm214_vm1, %v194_v19 }

</bundles_post_ra>
